<compile_context>
chip_gen: v7x
topology: tpu7x:2x2x1
jax: 0.10.0
libtpu: 0.0.40
codegen_flags: <defaults>
</compile_context>

<pallas_src>
import jax
import jax.numpy as jnp
import numpy as np
from jax import lax
from jax.experimental import pallas as pl
from jax.experimental.pallas import tpu as pltpu

LEAKY_SLOPE = 0.01  # nn.LeakyReLU() default negative_slope


# --------------------------------------------------------------------------
# Kernel
# --------------------------------------------------------------------------
def _resblock_kernel(x_ref, su_ref, sd_ref, m1_ref, b1_ref, m2_ref, b2_ref,
                     o_ref):
    # x_ref : (N*H, W*C)       lane-dense flattened NHWC input
    # su/sd : (N*H, N*H)       row-shift matrices (up / down, zero at borders)
    # m*_ref: (3, W*C, W*C)    banded conv weights (one per dy tap)
    # b*_ref: (1, W*C)         channel bias tiled along W
    # o_ref : (N*H, W*C)       output
    x = x_ref[...]
    su = su_ref[...]
    sd = sd_ref[...]

    def conv3x3(v, m_ref, b_ref):
        # dy = -1 / +1 row neighbours (zeros flow in at image boundaries).
        up = jnp.dot(su, v, preferred_element_type=jnp.float32)
        dn = jnp.dot(sd, v, preferred_element_type=jnp.float32)
        acc = jnp.dot(up, m_ref[0], preferred_element_type=jnp.float32)
        acc = acc + jnp.dot(v, m_ref[1], preferred_element_type=jnp.float32)
        acc = acc + jnp.dot(dn, m_ref[2], preferred_element_type=jnp.float32)
        return acc + b_ref[...]

    y = conv3x3(x, m1_ref, b1_ref)
    y = jnp.where(y > 0, y, LEAKY_SLOPE * y)          # LeakyReLU
    y = conv3x3(y, m2_ref, b2_ref)
    o_ref[...] = (x + y).astype(o_ref.dtype)          # residual add


# --------------------------------------------------------------------------
# Wrapper-side constant construction (weight repacking, done once under jit)
# --------------------------------------------------------------------------
def _make_band_weights(w_hwio, W):
    """(3,3,C,C) HWIO -> (3, W*C, W*C) banded matrices.

    M[dy, (w+dx-1)*C + ci, w*C + co] = w[dy, dx, ci, co] for in-range columns;
    out-of-range dx taps are simply absent, which implements zero padding in W.
    """
    C = w_hwio.shape[-1]
    ind = np.zeros((3, W, W), np.float32)
    for dx in range(3):
        for w in range(W):
            wi = w + dx - 1
            if 0 <= wi < W:
                ind[dx, wi, w] = 1.0
    m = jnp.einsum("xiw,dxab->diawb", jnp.asarray(ind), w_hwio)
    return m.reshape(3, W * C, W * C)


def _make_row_shift(N, H):
    """Shift matrices over the flattened (N*H) row axis, zero across images."""
    NH = N * H
    s_up = np.zeros((NH, NH), np.float32)
    s_dn = np.zeros((NH, NH), np.float32)
    for r in range(NH):
        if r % H != 0:
            s_up[r, r - 1] = 1.0      # (S_up @ x)[r] = x[r-1], 0 at top row
        if r % H != H - 1:
            s_dn[r, r + 1] = 1.0      # (S_dn @ x)[r] = x[r+1], 0 at bottom row
    return jnp.asarray(s_up), jnp.asarray(s_dn)


@jax.jit
def resblock_pallas(x_nchw, w1, b1, w2, b2):
    """x_nchw: (N, C, H, W) float32.  w*: (3, 3, C, C) HWIO.  b*: (C,)."""
    N, C, H, W = x_nchw.shape
    NH, WC = N * H, W * C

    x2d = jnp.transpose(x_nchw, (0, 2, 3, 1)).reshape(NH, WC)   # NCHW->NHWC->2D
    m1 = _make_band_weights(w1, W)
    m2 = _make_band_weights(w2, W)
    s_up, s_dn = _make_row_shift(N, H)
    b1r = jnp.tile(b1, W).reshape(1, WC)
    b2r = jnp.tile(b2, W).reshape(1, WC)

    out2d = pl.pallas_call(
        _resblock_kernel,
        out_shape=jax.ShapeDtypeStruct((NH, WC), x_nchw.dtype),
        grid_spec=pltpu.PrefetchScalarGridSpec(
            num_scalar_prefetch=0,
            grid=(1,),                      # whole batch in one grid step
            in_specs=[
                pl.BlockSpec((NH, WC), lambda i: (0, 0)),
                pl.BlockSpec((NH, NH), lambda i: (0, 0)),
                pl.BlockSpec((NH, NH), lambda i: (0, 0)),
                pl.BlockSpec((3, WC, WC), lambda i: (0, 0, 0)),
                pl.BlockSpec((1, WC), lambda i: (0, 0)),
                pl.BlockSpec((3, WC, WC), lambda i: (0, 0, 0)),
                pl.BlockSpec((1, WC), lambda i: (0, 0)),
            ],
            out_specs=pl.BlockSpec((NH, WC), lambda i: (0, 0)),
        ),
        compiler_params=pltpu.CompilerParams(
            dimension_semantics=("arbitrary",)),
    )(x2d, s_up, s_dn, m1, b1r, m2, b2r)

    return jnp.transpose(out2d.reshape(N, H, W, C), (0, 3, 1, 2))  # -> NCHW


# --------------------------------------------------------------------------
# Pure-JAX reference of the PyTorch ResBlock forward (NCHW in/out)
# --------------------------------------------------------------------------
def resblock_reference(x_nchw, w1, b1, w2, b2):
    x = jnp.transpose(x_nchw, (0, 2, 3, 1))
    dn = lax.conv_dimension_numbers(x.shape, w1.shape, ("NHWC", "HWIO", "NHWC"))
    y = lax.conv_general_dilated(x, w1, (1, 1), "SAME", dimension_numbers=dn) + b1
    y = jnp.where(y > 0, y, LEAKY_SLOPE * y)
    y = lax.conv_general_dilated(y, w2, (1, 1), "SAME", dimension_numbers=dn) + b2
    return jnp.transpose(x + y, (0, 3, 1, 2))


if __name__ == "__main__":
    # Small shapes consistent with the module: batch=2, channels=4, spatial=16.
    N, C, H, W = 2, 4, 16, 16
    key = jax.random.PRNGKey(0)
    kx, kw1, kb1, kw2, kb2 = jax.random.split(key, 5)

    x = jax.random.normal(kx, (N, C, H, W), dtype=jnp.float32)
    # Deterministic synthetic parameters (common.layer_init ~ small-scale init).
    w1 = jax.random.normal(kw1, (3, 3, C, C), dtype=jnp.float32) * 0.1
    b1 = jax.random.normal(kb1, (C,), dtype=jnp.float32) * 0.01
    w2 = jax.random.normal(kw2, (3, 3, C, C), dtype=jnp.float32) * 0.1
    b2 = jax.random.normal(kb2, (C,), dtype=jnp.float32) * 0.01

    out = resblock_pallas(x, w1, b1, w2, b2)
    out = jax.block_until_ready(out)

    ref = jax.block_until_ready(resblock_reference(x, w1, b1, w2, b2))
    np.testing.assert_allclose(np.asarray(out), np.asarray(ref),
                               rtol=1e-5, atol=1e-5)
    print("KERNEL_OK")
</pallas_src>

<mosaic_0001>
module attributes {stable_mosaic.version = 11 : i64} {
  func.func @_resblock_kernel(%arg0: i32, %arg1: memref<32x64xf32, #tpu.memory_space<vmem>>, %arg2: memref<32x32xf32, #tpu.memory_space<vmem>>, %arg3: memref<32x32xf32, #tpu.memory_space<vmem>>, %arg4: memref<3x64x64xf32, #tpu.memory_space<vmem>>, %arg5: memref<1x64xf32, #tpu.memory_space<vmem>>, %arg6: memref<3x64x64xf32, #tpu.memory_space<vmem>>, %arg7: memref<1x64xf32, #tpu.memory_space<vmem>>, %arg8: memref<32x64xf32, #tpu.memory_space<vmem>>) attributes {dimension_semantics = [#tpu.dimension_semantics<arbitrary>], iteration_bounds = array<i64: 1>, scalar_prefetch = 0 : i64, scratch_operands = 0 : i64, tpu.core_type = #tpu.core_type<tc>, window_params = [{pipeline_mode = #tpu.pipeline_mode<synchronous>, transform_indices = @transform_0, window_bounds = array<i64: 32, 64>}, {pipeline_mode = #tpu.pipeline_mode<synchronous>, transform_indices = @transform_1, window_bounds = array<i64: 32, 32>}, {pipeline_mode = #tpu.pipeline_mode<synchronous>, transform_indices = @transform_2, window_bounds = array<i64: 32, 32>}, {pipeline_mode = #tpu.pipeline_mode<synchronous>, transform_indices = @transform_3, window_bounds = array<i64: 3, 64, 64>}, {pipeline_mode = #tpu.pipeline_mode<synchronous>, transform_indices = @transform_4, window_bounds = array<i64: 1, 64>}, {pipeline_mode = #tpu.pipeline_mode<synchronous>, transform_indices = @transform_5, window_bounds = array<i64: 3, 64, 64>}, {pipeline_mode = #tpu.pipeline_mode<synchronous>, transform_indices = @transform_6, window_bounds = array<i64: 1, 64>}, {pipeline_mode = #tpu.pipeline_mode<synchronous>, transform_indices = @transform_7, window_bounds = array<i64: 32, 64>}]} {
    %c0 = arith.constant 0 : index
    %c0_0 = arith.constant 0 : index
    %0 = vector.load %arg1[%c0, %c0_0] : memref<32x64xf32, #tpu.memory_space<vmem>>, vector<32x64xf32>
    %c0_1 = arith.constant 0 : index
    %c0_2 = arith.constant 0 : index
    %1 = vector.load %arg2[%c0_1, %c0_2] : memref<32x32xf32, #tpu.memory_space<vmem>>, vector<32x32xf32>
    %c0_3 = arith.constant 0 : index
    %c0_4 = arith.constant 0 : index
    %2 = vector.load %arg3[%c0_3, %c0_4] : memref<32x32xf32, #tpu.memory_space<vmem>>, vector<32x32xf32>
    %cst = arith.constant dense<0.000000e+00> : vector<32x64xf32>
    %3 = tpu.matmul %1, %0, %cst {dimension_numbers = #tpu.dot_dimension_numbers<[1], [0], [0], [1], [0, 0, 1, 1], [], []>} : vector<32x32xf32>, vector<32x64xf32>, vector<32x64xf32> -> vector<32x64xf32>
    %cst_5 = arith.constant dense<0.000000e+00> : vector<32x64xf32>
    %4 = tpu.matmul %2, %0, %cst_5 {dimension_numbers = #tpu.dot_dimension_numbers<[1], [0], [0], [1], [0, 0, 1, 1], [], []>} : vector<32x32xf32>, vector<32x64xf32>, vector<32x64xf32> -> vector<32x64xf32>
    %c0_6 = arith.constant 0 : index
    %c0_7 = arith.constant 0 : index
    %c0_8 = arith.constant 0 : index
    %5 = vector.load %arg4[%c0_6, %c0_7, %c0_8] : memref<3x64x64xf32, #tpu.memory_space<vmem>>, vector<1x64x64xf32>
    %6 = vector.shape_cast %5 : vector<1x64x64xf32> to vector<64x64xf32>
    %cst_9 = arith.constant dense<0.000000e+00> : vector<32x64xf32>
    %7 = tpu.matmul %3, %6, %cst_9 {dimension_numbers = #tpu.dot_dimension_numbers<[1], [0], [0], [1], [0, 0, 1, 1], [], []>} : vector<32x64xf32>, vector<64x64xf32>, vector<32x64xf32> -> vector<32x64xf32>
    %c1 = arith.constant 1 : index
    %c0_10 = arith.constant 0 : index
    %c0_11 = arith.constant 0 : index
    %8 = vector.load %arg4[%c1, %c0_10, %c0_11] : memref<3x64x64xf32, #tpu.memory_space<vmem>>, vector<1x64x64xf32>
    %9 = vector.shape_cast %8 : vector<1x64x64xf32> to vector<64x64xf32>
    %cst_12 = arith.constant dense<0.000000e+00> : vector<32x64xf32>
    %10 = tpu.matmul %0, %9, %cst_12 {dimension_numbers = #tpu.dot_dimension_numbers<[1], [0], [0], [1], [0, 0, 1, 1], [], []>} : vector<32x64xf32>, vector<64x64xf32>, vector<32x64xf32> -> vector<32x64xf32>
    %11 = arith.addf %7, %10 : vector<32x64xf32>
    %c2 = arith.constant 2 : index
    %c0_13 = arith.constant 0 : index
    %c0_14 = arith.constant 0 : index
    %12 = vector.load %arg4[%c2, %c0_13, %c0_14] : memref<3x64x64xf32, #tpu.memory_space<vmem>>, vector<1x64x64xf32>
    %13 = vector.shape_cast %12 : vector<1x64x64xf32> to vector<64x64xf32>
    %cst_15 = arith.constant dense<0.000000e+00> : vector<32x64xf32>
    %14 = tpu.matmul %4, %13, %cst_15 {dimension_numbers = #tpu.dot_dimension_numbers<[1], [0], [0], [1], [0, 0, 1, 1], [], []>} : vector<32x64xf32>, vector<64x64xf32>, vector<32x64xf32> -> vector<32x64xf32>
    %15 = arith.addf %11, %14 : vector<32x64xf32>
    %c0_16 = arith.constant 0 : index
    %c0_17 = arith.constant 0 : index
    %16 = vector.load %arg5[%c0_16, %c0_17] : memref<1x64xf32, #tpu.memory_space<vmem>>, vector<1x64xf32>
    %17 = vector.broadcast %16 : vector<1x64xf32> to vector<32x64xf32>
    %18 = arith.addf %15, %17 : vector<32x64xf32>
    %cst_18 = arith.constant 0.000000e+00 : f32
    %19 = vector.broadcast %cst_18 : f32 to vector<32x64xf32>
    %20 = arith.cmpf ogt, %18, %19 : vector<32x64xf32>
    %cst_19 = arith.constant 0.00999999977 : f32
    %21 = vector.broadcast %cst_19 : f32 to vector<32x64xf32>
    %22 = arith.mulf %21, %18 : vector<32x64xf32>
    %23 = arith.select %20, %18, %22 : vector<32x64xi1>, vector<32x64xf32>
    %cst_20 = arith.constant dense<0.000000e+00> : vector<32x64xf32>
    %24 = tpu.matmul %1, %23, %cst_20 {dimension_numbers = #tpu.dot_dimension_numbers<[1], [0], [0], [1], [0, 0, 1, 1], [], []>} : vector<32x32xf32>, vector<32x64xf32>, vector<32x64xf32> -> vector<32x64xf32>
    %cst_21 = arith.constant dense<0.000000e+00> : vector<32x64xf32>
    %25 = tpu.matmul %2, %23, %cst_21 {dimension_numbers = #tpu.dot_dimension_numbers<[1], [0], [0], [1], [0, 0, 1, 1], [], []>} : vector<32x32xf32>, vector<32x64xf32>, vector<32x64xf32> -> vector<32x64xf32>
    %c0_22 = arith.constant 0 : index
    %c0_23 = arith.constant 0 : index
    %c0_24 = arith.constant 0 : index
    %26 = vector.load %arg6[%c0_22, %c0_23, %c0_24] : memref<3x64x64xf32, #tpu.memory_space<vmem>>, vector<1x64x64xf32>
    %27 = vector.shape_cast %26 : vector<1x64x64xf32> to vector<64x64xf32>
    %cst_25 = arith.constant dense<0.000000e+00> : vector<32x64xf32>
    %28 = tpu.matmul %24, %27, %cst_25 {dimension_numbers = #tpu.dot_dimension_numbers<[1], [0], [0], [1], [0, 0, 1, 1], [], []>} : vector<32x64xf32>, vector<64x64xf32>, vector<32x64xf32> -> vector<32x64xf32>
    %c1_26 = arith.constant 1 : index
    %c0_27 = arith.constant 0 : index
    %c0_28 = arith.constant 0 : index
    %29 = vector.load %arg6[%c1_26, %c0_27, %c0_28] : memref<3x64x64xf32, #tpu.memory_space<vmem>>, vector<1x64x64xf32>
    %30 = vector.shape_cast %29 : vector<1x64x64xf32> to vector<64x64xf32>
    %cst_29 = arith.constant dense<0.000000e+00> : vector<32x64xf32>
    %31 = tpu.matmul %23, %30, %cst_29 {dimension_numbers = #tpu.dot_dimension_numbers<[1], [0], [0], [1], [0, 0, 1, 1], [], []>} : vector<32x64xf32>, vector<64x64xf32>, vector<32x64xf32> -> vector<32x64xf32>
    %32 = arith.addf %28, %31 : vector<32x64xf32>
    %c2_30 = arith.constant 2 : index
    %c0_31 = arith.constant 0 : index
    %c0_32 = arith.constant 0 : index
    %33 = vector.load %arg6[%c2_30, %c0_31, %c0_32] : memref<3x64x64xf32, #tpu.memory_space<vmem>>, vector<1x64x64xf32>
    %34 = vector.shape_cast %33 : vector<1x64x64xf32> to vector<64x64xf32>
    %cst_33 = arith.constant dense<0.000000e+00> : vector<32x64xf32>
    %35 = tpu.matmul %25, %34, %cst_33 {dimension_numbers = #tpu.dot_dimension_numbers<[1], [0], [0], [1], [0, 0, 1, 1], [], []>} : vector<32x64xf32>, vector<64x64xf32>, vector<32x64xf32> -> vector<32x64xf32>
    %36 = arith.addf %32, %35 : vector<32x64xf32>
    %c0_34 = arith.constant 0 : index
    %c0_35 = arith.constant 0 : index
    %37 = vector.load %arg7[%c0_34, %c0_35] : memref<1x64xf32, #tpu.memory_space<vmem>>, vector<1x64xf32>
    %38 = vector.broadcast %37 : vector<1x64xf32> to vector<32x64xf32>
    %39 = arith.addf %36, %38 : vector<32x64xf32>
    %40 = arith.addf %0, %39 : vector<32x64xf32>
    %c0_36 = arith.constant 0 : index
    %c0_37 = arith.constant 0 : index
    %41 = vector.load %arg8[%c0_36, %c0_37] : memref<32x64xf32, #tpu.memory_space<vmem>>, vector<32x64xf32>
    tpu.vector_store %arg8[%c0_36, %c0_37], %40 {strides = array<i32>} : memref<32x64xf32, #tpu.memory_space<vmem>>, vector<32x64xf32>,
    return
  }
  func.func @transform_0(%arg0: i32) -> (i32, i32) {
    %c0_i32 = arith.constant 0 : i32
    %c0_i32_0 = arith.constant 0 : i32
    %c0_i32_1 = arith.constant 0 : i32
    return %c0_i32, %c0_i32_0 : i32, i32
  }
  func.func @transform_1(%arg0: i32) -> (i32, i32) {
    %c0_i32 = arith.constant 0 : i32
    %c0_i32_0 = arith.constant 0 : i32
    %c0_i32_1 = arith.constant 0 : i32
    return %c0_i32, %c0_i32_0 : i32, i32
  }
  func.func @transform_2(%arg0: i32) -> (i32, i32) {
    %c0_i32 = arith.constant 0 : i32
    %c0_i32_0 = arith.constant 0 : i32
    %c0_i32_1 = arith.constant 0 : i32
    return %c0_i32, %c0_i32_0 : i32, i32
  }
  func.func @transform_3(%arg0: i32) -> (i32, i32, i32) {
    %c0_i32 = arith.constant 0 : i32
    %c0_i32_0 = arith.constant 0 : i32
    %c0_i32_1 = arith.constant 0 : i32
    %c0_i32_2 = arith.constant 0 : i32
    return %c0_i32, %c0_i32_0, %c0_i32_1 : i32, i32, i32
  }
  func.func @transform_4(%arg0: i32) -> (i32, i32) {
    %c0_i32 = arith.constant 0 : i32
    %c0_i32_0 = arith.constant 0 : i32
    %c0_i32_1 = arith.constant 0 : i32
    return %c0_i32, %c0_i32_0 : i32, i32
  }
  func.func @transform_5(%arg0: i32) -> (i32, i32, i32) {
    %c0_i32 = arith.constant 0 : i32
    %c0_i32_0 = arith.constant 0 : i32
    %c0_i32_1 = arith.constant 0 : i32
    %c0_i32_2 = arith.constant 0 : i32
    return %c0_i32, %c0_i32_0, %c0_i32_1 : i32, i32, i32
  }
  func.func @transform_6(%arg0: i32) -> (i32, i32) {
    %c0_i32 = arith.constant 0 : i32
    %c0_i32_0 = arith.constant 0 : i32
    %c0_i32_1 = arith.constant 0 : i32
    return %c0_i32, %c0_i32_0 : i32, i32
  }
  func.func @transform_7(%arg0: i32) -> (i32, i32) {
    %c0_i32 = arith.constant 0 : i32
    %c0_i32_0 = arith.constant 0 : i32
    %c0_i32_1 = arith.constant 0 : i32
    return %c0_i32, %c0_i32_0 : i32, i32
  }
}

</mosaic_0001>

<bundles_post_ra>
// kernel: tile.13
= control target key start
LH: loop header
LB: loop body
LE: loop exit
PB: predicated region body
PF: predicated region fallthrough
CT: control target
= control target key end

     0   :  { %s28_s0 = inlined_call_operand.vmem [shape: f32[4], index: 0, kind: input, shape index: {}]   ;;  %s29_s1 = inlined_call_operand.vmem [shape: f32[16,4], index: 1, kind: output, shape index: {}]  }
   0x1   :  { %v4_v0 = vld [vmem:[%s28_s0] ss:$0 sm:$0xff] }
   0x2   :  { %5 = vst [vmem:[%s29_s1] sm:$0xff] %v4_v0  ;;  %8 = vst [vmem:[%s29_s1 + $0x8] sm:$0xff] %v4_v0 }

// kernel: tile.14
= control target key start
LH: loop header
LB: loop body
LE: loop exit
PB: predicated region body
PF: predicated region fallthrough
CT: control target
= control target key end

     0   :  { %s131_s10 = smov 60   ;;  %s132_s11 = smov 52   ;;  %vm3_vm0 = vcmask 31744   ;;  %vm9_vm1 = vcmask 523744   ;;  %vm15_vm2 = vcmask 490944   ;;  %vm21_vm3 = vcmask 458144   ;;  %s207_s0 = inlined_call_operand.vmem [shape: f32[16,4], index: 0, kind: input, shape index: {}]   ;;  %s208_s1 = inlined_call_operand.vmem [shape: f32[1,64], index: 1, kind: output, shape index: {}]  }
   0x1   :  { %v101_v0 = vld [vmem:[%s207_s0 + $0xf] sm:$0x1]   ;;  %v103_v1 = vld [vmem:[%s207_s0 + $0xd] sm:$0x1]   ;;  %v102_v2 = vld [vmem:[%s207_s0 + $0xe] sm:$0x1]  }
   0x2   :  { %7 = vrot.lane.b32.xlu0 %v101_v0, %s131_s10  ;;  %19 = vrot.lane.b32.xlu1 %v103_v1, %s132_s11  ;;  %v104_v3 = vld [vmem:[%s207_s0 + $0xc] sm:$0x1]   ;;  %s133_s16 = smov 56   ;;  %s134_s17 = smov 48   ;;  %v105_v4 = vld [vmem:[%s207_s0 + $0xb] sm:$0x1]  }
   0x3   :  { %v106_v5 = vld [vmem:[%s207_s0 + $0xa] sm:$0x1]   ;;  %v2_v6 = vld [vmem:[%s207_s0] sm:$0x1]   ;;  %s135_s24 = smov 44   ;;  %s136_s25 = smov 40  }
   0x4   :  { %4 = vst.msk [vmem:[#allocation0] sm:$0x1] %vm3_vm0, %v2_v6   ;;  %v107_v7 = vld [vmem:[%s207_s0 + $0x9] sm:$0x1]   ;;  %v108_v8 = vld [vmem:[%s207_s0 + $0x8] sm:$0x1]  }
   0x5   :  { %s137_s30 = smov 36   ;;  %s138_s2 = smov 32   ;;  %v109_v9 = vld [vmem:[%s207_s0 + $0x7] sm:$0x1]   ;;  %v110_v10 = vld [vmem:[%s207_s0 + $0x6] sm:$0x1]  }
   0x6   :  { %13 = vrot.lane.b32.xlu0 %v102_v2, %s133_s16  ;;  %25 = vrot.lane.b32.xlu1 %v104_v3, %s134_s17  ;;  %s139_s7 = smov 28   ;;  %s140_s8 = smov 24   ;;  %v111_v11 = vld [vmem:[%s207_s0 + $0x5] sm:$0x1]   ;;  %v112_v12 = vld [vmem:[%s207_s0 + $0x4] sm:$0x1]  }
   0x7   :  { %s141_s13 = smov 20   ;;  %s142_s14 = smov 16   ;;  %v113_v13 = vld [vmem:[%s207_s0 + $0x3] sm:$0x1]   ;;  %v114_v14 = vld [vmem:[%s207_s0 + $0x2] sm:$0x1]  }
   0x8   :  { %s143_s19 = smov 12   ;;  %s144_s20 = smov 8   ;;  %v115_v15 = vld [vmem:[%s207_s0 + $0x1] sm:$0x1]   ;;  %vm27_vm4 = vcmask 425344   ;;  %vm33_vm5 = vcmask 392544  }
   0x9   :  { %s145_s0 = smov 4   ;;  %vm39_vm6 = vcmask 359744   ;;  %vm45_vm7 = vcmask 326944   ;;  %vm51_vm8 = vcmask 294144   ;;  %vm57_vm9 = vcmask 261344  }
   0xa   :  { %31 = vrot.lane.b32.xlu0 %v105_v4, %s135_s24  ;;  %37 = vrot.lane.b32.xlu1 %v106_v5, %s136_s25  ;;  %vm63_vm10 = vcmask 228544   ;;  %vm69_vm11 = vcmask 195744   ;;  %vm75_vm12 = vcmask 162944   ;;  %vm81_vm13 = vcmask 130144  }
   0xb   :  { %vm87_vm14 = vcmask 97344   ;;  %vm93_vm15 = vcmask 64544  }
   0xe   :  { %43 = vrot.lane.b32.xlu0 %v107_v7, %s137_s30  ;;  %49 = vrot.lane.b32.xlu1 %v108_v8, %s138_s2 }
  0x12   :  { %55 = vrot.lane.b32.xlu0 %v109_v9, %s139_s7  ;;  %61 = vrot.lane.b32.xlu1 %v110_v10, %s140_s8 }
  0x16   :  { %67 = vrot.lane.b32.xlu0 %v111_v11, %s141_s13  ;;  %73 = vrot.lane.b32.xlu1 %v112_v12, %s142_s14 }
  0x1a   :  { %79 = vrot.lane.b32.xlu0 %v113_v13, %s143_s19  ;;  %85 = vrot.lane.b32.xlu1 %v114_v14, %s144_s20 }
  0x1e   :  { %91 = vrot.lane.b32.xlu0 %v115_v15, %s145_s0 }
  0x74   :  { %v8_v16 = vpop.permute.xlu0 %7   ;;  %v20_v17 = vpop.permute.xlu1 %19  }
  0x75   :  { %10 = vst.msk [vmem:[#allocation0] sm:$0x1] %vm9_vm1, %v8_v16  }
  0x78   :  { %v14_v18 = vpop.permute.xlu0 %13   ;;  %v26_v19 = vpop.permute.xlu1 %25  }
  0x79   :  { %16 = vst.msk [vmem:[#allocation0] sm:$0x1] %vm15_vm2, %v14_v18  }
  0x7a   :  { %22 = vst.msk [vmem:[#allocation0] sm:$0x1] %vm21_vm3, %v20_v17  }
  0x7b   :  { %28 = vst.msk [vmem:[#allocation0] sm:$0x1] %vm27_vm4, %v26_v19  }
  0x7c   :  { %v32_v20 = vpop.permute.xlu0 %31   ;;  %v38_v21 = vpop.permute.xlu1 %37  }
  0x7d   :  { %34 = vst.msk [vmem:[#allocation0] sm:$0x1] %vm33_vm5, %v32_v20  }
  0x7e   :  { %40 = vst.msk [vmem:[#allocation0] sm:$0x1] %vm39_vm6, %v38_v21  }
  0x80   :  { %v44_v22 = vpop.permute.xlu0 %43   ;;  %v50_v23 = vpop.permute.xlu1 %49  }
  0x81   :  { %46 = vst.msk [vmem:[#allocation0] sm:$0x1] %vm45_vm7, %v44_v22  }
  0x82   :  { %52 = vst.msk [vmem:[#allocation0] sm:$0x1] %vm51_vm8, %v50_v23  }
  0x84   :  { %v56_v24 = vpop.permute.xlu0 %55   ;;  %v62_v25 = vpop.permute.xlu1 %61  }
  0x85   :  { %58 = vst.msk [vmem:[#allocation0] sm:$0x1] %vm57_vm9, %v56_v24  }
  0x86   :  { %64 = vst.msk [vmem:[#allocation0] sm:$0x1] %vm63_vm10, %v62_v25  }
  0x88   :  { %v68_v26 = vpop.permute.xlu0 %67   ;;  %v74_v27 = vpop.permute.xlu1 %73  }
  0x89   :  { %70 = vst.msk [vmem:[#allocation0] sm:$0x1] %vm69_vm11, %v68_v26  }
  0x8a   :  { %76 = vst.msk [vmem:[#allocation0] sm:$0x1] %vm75_vm12, %v74_v27  }
  0x8c   :  { %v80_v28 = vpop.permute.xlu0 %79   ;;  %v86_v29 = vpop.permute.xlu1 %85  }
  0x8d   :  { %82 = vst.msk [vmem:[#allocation0] sm:$0x1] %vm81_vm13, %v80_v28  }
  0x8e   :  { %88 = vst.msk [vmem:[#allocation0] sm:$0x1] %vm87_vm14, %v86_v29  }
  0x90   :  { %v92_v30 = vpop.permute.xlu0 %91  }
  0x91   :  { %94 = vst.msk [vmem:[#allocation0] sm:$0x1] %vm93_vm15, %v92_v30  }
  0x98   :  { %v98_v31 = vld [vmem:[#allocation0] sm:$0x1] }
  0x99   :  { %100 = vst [vmem:[%s208_s1] sm:$0x1] %v98_v31 }

// kernel: resblock_pallas.1
= control target key start
LH: loop header
LB: loop body
LE: loop exit
PB: predicated region body
PF: predicated region fallthrough
CT: control target
= control target key end

     0   :  { %vm38_vm0 = vcmask 261120   ;;  %vm250_vm1 = vcmask 523264   ;;  %s1932_s0 = inlined_call_operand.vmem [shape: f32[32,64], index: 0, kind: input, shape index: {}]   ;;  %s1933_s1 = inlined_call_operand.vmem [shape: f32[32,32], index: 1, kind: input, shape index: {}]   ;;  %s1934_s3 = inlined_call_operand.vmem [shape: f32[3,64,64], index: 3, kind: input, shape index: {}]   ;;  %s1935_s2 = inlined_call_operand.vmem [shape: f32[32,32], index: 2, kind: input, shape index: {}]   ;;  %s1936_s4 = inlined_call_operand.vmem [shape: f32[1,64], index: 4, kind: input, shape index: {}]   ;;  %s1937_s5 = inlined_call_operand.vmem [shape: f32[3,64,64], index: 5, kind: input, shape index: {}]   ;;  %s1938_s6 = inlined_call_operand.vmem [shape: f32[1,64], index: 6, kind: input, shape index: {}]   ;;  %s1939_s7 = inlined_call_operand.vmem [shape: f32[32,64], index: 7, kind: output, shape index: {}]  }
   0x1   :  { %v1645_v0 = vld [vmem:[%s1932_s0] sm:$0xff]  ;;  %v1650_v1 = vld [vmem:[%s1932_s0 + $0x8] sm:$0xff]  ;;  %v1655_v2 = vld [vmem:[%s1932_s0 + $0x10] sm:$0xff] }
   0x2   :  { %v1458_v3 = vpack.c.bf16 %v1650_v1, %v1645_v0  ;;  %v1662_v4 = vld [vmem:[%s1932_s0 + $0x18] sm:$0xff]  ;;  %v30_v5 = vld [vmem:[%s1933_s1] sm:$0xff]  ;;  %v1674_v7 = vld [vmem:[%s1933_s1 + $0x8] sm:$0xff] }
   0x3   :  { %v1462_v6 = vpack.c.bf16 %v1662_v4, %v1655_v2  ;;  %1278 = vmatprep.mubr.msk.f32.mxu0 %vm38_vm0, %v30_v5  ;;  %1372 = vmatprep.mubr.msk.f32.mxu1 %vm38_vm0, %v30_v5  ;;  %v1679_v8 = vld [vmem:[%s1933_s1 + $0x10] sm:$0xff]  ;;  %v1100_v9 = vld [vmem:[%s1934_s3 + $0x40] sm:$0xff]  ;;  %v1101_v10 = vld [vmem:[%s1934_s3 + $0x48] sm:$0xff] }
   0x4   :  { %1459 = vmatprep.subr.bf16.mxu0 %v1458_v3  ;;  %v1694_v11 = vld [vmem:[%s1933_s1 + $0x18] sm:$0xff]  ;;  %v1699_v12 = vld [vmem:[%s1935_s2] sm:$0xff]  ;;  %v1474_v13 = vpack.c.bf16 %v1101_v10, %v1100_v9  ;;  %v1102_v14 = vld [vmem:[%s1934_s3 + $0x50] sm:$0xff] }
   0x5   :  { %1461 = vmatpush3.bf16.msra.mxu0 %v1458_v3  ;;  %v1103_v15 = vld [vmem:[%s1934_s3 + $0x58] sm:$0xff]  ;;  %v1714_v16 = vld [vmem:[%s1935_s2 + $0x8] sm:$0xff]  ;;  %v1719_v17 = vld [vmem:[%s1935_s2 + $0x10] sm:$0xff] }
   0x6   :  { %1463 = vmatprep.subr.bf16.mxu0 %v1462_v6  ;;  %v1478_v18 = vpack.c.bf16 %v1103_v15, %v1102_v14  ;;  %v1104_v19 = vld [vmem:[%s1934_s3 + $0x60] sm:$0xff]  ;;  %v1105_v20 = vld [vmem:[%s1934_s3 + $0x68] sm:$0xff]  ;;  %v1734_v21 = vld [vmem:[%s1935_s2 + $0x18] sm:$0xff] }
   0x7   :  { %v1482_v22 = vpack.c.bf16 %v1105_v20, %v1104_v19  ;;  %v1106_v23 = vld [vmem:[%s1934_s3 + $0x70] sm:$0xff]  ;;  %v1107_v24 = vld [vmem:[%s1934_s3 + $0x78] sm:$0xff]  ;;  %v233_v26 = vld [vmem:[%s1934_s3] sm:$0xff] }
   0x8   :  { %v1486_v25 = vpack.c.bf16 %v1107_v24, %v1106_v23  ;;  %v234_v27 = vld [vmem:[%s1934_s3 + $0x8] sm:$0xff]  ;;  %v235_v29 = vld [vmem:[%s1934_s3 + $0x10] sm:$0xff]  ;;  %v236_v30 = vld [vmem:[%s1934_s3 + $0x18] sm:$0xff] }
   0x9   :  { %1465 = vmatpush3.bf16.msra.mxu0 %v1462_v6  ;;  %v1490_v28 = vpack.c.bf16 %v234_v27, %v233_v26  ;;  %v1494_v31 = vpack.c.bf16 %v236_v30, %v235_v29  ;;  %v237_v32 = vld [vmem:[%s1934_s3 + $0x20] sm:$0xff]  ;;  %v238_v33 = vld [vmem:[%s1934_s3 + $0x28] sm:$0xff]  ;;  %v239_v35 = vld [vmem:[%s1934_s3 + $0x30] sm:$0xff] }
   0xa   :  { %1467 = vmatprep.subr.bf16.mxu0 %v1458_v3  ;;  %v1498_v34 = vpack.c.bf16 %v238_v33, %v237_v32  ;;  %v240_v36 = vld [vmem:[%s1934_s3 + $0x38] sm:$0xff]  ;;  %v1116_v38 = vld [vmem:[%s1934_s3 + $0x80] sm:$0xff]  ;;  %v1117_v39 = vld [vmem:[%s1934_s3 + $0x88] sm:$0xff] }
   0xb   :  { %v1502_v37 = vpack.c.bf16 %v240_v36, %v239_v35  ;;  %v1506_v40 = vpack.c.bf16 %v1117_v39, %v1116_v38  ;;  %v1118_v41 = vld [vmem:[%s1934_s3 + $0x90] sm:$0xff]  ;;  %v1119_v42 = vld [vmem:[%s1934_s3 + $0x98] sm:$0xff]  ;;  %v1120_v46 = vld [vmem:[%s1934_s3 + $0xa0] sm:$0xff] }
   0xc   :  { %1279 = vmatmul.mubr.msk.f32.vlgmr.msra.gmra.mrb[0].mxu0 %vm38_vm0, %v1674_v7  ;;  %v1510_v45 = vpack.c.bf16 %v1119_v42, %v1118_v41  ;;  %v1121_v47 = vld [vmem:[%s1934_s3 + $0xa8] sm:$0xff]  ;;  %v1122_v51 = vld [vmem:[%s1934_s3 + $0xb0] sm:$0xff]  ;;  %v1123_v52 = vld [vmem:[%s1934_s3 + $0xb8] sm:$0xff] }
   0xd   :  { %1469 = vmatpush3.bf16.msra.mxu0 %v1458_v3  ;;  %1281 = vmatprep.mubr.msk.f32.mxu0 %vm38_vm0, %v1679_v8  ;;  %v1514_v50 = vpack.c.bf16 %v1121_v47, %v1120_v46  ;;  %v1518_v54 = vpack.c.bf16 %v1123_v52, %v1122_v51  ;;  %v1128_v58 = vld [vmem:[%s1936_s4] ss:$0 sm:$0xff]  ;;  %v1139_v27 = vld [vmem:[%s1937_s5 + $0x50] sm:$0xff]  ;;  %v1142_v29 = vld [vmem:[%s1937_s5 + $0x68] sm:$0xff] }
   0xe   :  { %1471 = vmatprep.subr.bf16.mxu0 %v1462_v6  ;;  %v1137_v24 = vld [vmem:[%s1937_s5 + $0x40] sm:$0xff]  ;;  %v1144_v30 = vld [vmem:[%s1937_s5 + $0x78] sm:$0xff]  ;;  %v753_v36 = vld [vmem:[%s1937_s5 + $0x28] sm:$0xff] }
   0xf   :  { %v751_v33 = vld [vmem:[%s1937_s5 + $0x18] sm:$0xff]  ;;  %v752_v35 = vld [vmem:[%s1937_s5 + $0x20] sm:$0xff]  ;;  %v754_v38 = vld [vmem:[%s1937_s5 + $0x30] sm:$0xff] }
  0x10   :  { %1282 = vmatmul.mubr.msk.f32.gmra.mrb[2].mxu0 %vm38_vm0, %v1694_v11  ;;  %v755_v39 = vld [vmem:[%s1937_s5 + $0x38] sm:$0xff]  ;;  %v1153_v41 = vld [vmem:[%s1937_s5 + $0x80] sm:$0xff]  ;;  %v1154_v42 = vld [vmem:[%s1937_s5 + $0x88] sm:$0xff] }
  0x11   :  { %1473 = vmatpush3.bf16.msra.mxu0 %v1462_v6  ;;  %1292 = vmatprep.mubr.msk.f32.mxu0 %vm38_vm0, %v1699_v12 }
  0x12   :  { %1475 = vmatprep.subr.bf16.mxu0 %v1474_v13 }
  0x14   :  { %1293 = vmatmul.mubr.msk.f32.vlgmr.msra.gmra.mrb[4].mxu0 %vm38_vm0, %v1714_v16 }
  0x15   :  { %1295 = vmatprep.mubr.msk.f32.mxu0 %vm38_vm0, %v1719_v17  ;;  %1477 = vmatpush3.bf16.msra.mxu0 %v1474_v13 }
  0x16   :  { %1479 = vmatprep.subr.bf16.mxu0 %v1478_v18 }
  0x18   :  { %1296 = vmatmul.mubr.msk.f32.gmra.mrb[6].mxu0 %vm38_vm0, %v1734_v21 }
  0x19   :  { %1481 = vmatpush3.bf16.msra.mxu0 %v1478_v18  ;;  %1314 = vmatprep.mubr.msk.f32.mxu0 %vm250_vm1, %v1645_v0 }
  0x1a   :  { %1483 = vmatprep.subr.bf16.mxu0 %v1482_v22 }
  0x1d   :  { %1485 = vmatpush3.bf16.msra.mxu0 %v1482_v22 }
  0x1e   :  { %1487 = vmatprep.subr.bf16.mxu0 %v1486_v25 }
  0x21   :  { %1489 = vmatpush3.bf16.msra.mxu0 %v1486_v25  ;;  %v1138_v25 = vld [vmem:[%s1937_s5 + $0x48] sm:$0xff] }
  0x22   :  { %1491 = vmatprep.subr.bf16.mxu0 %v1490_v28  ;;  %v1538_v26 = vpack.c.bf16 %v1138_v25, %v1137_v24 }
  0x24   :  { %1315 = vmatmul.mubr.msk.f32.vlgmr.msra.gmra.mrb[8].mxu0 %vm250_vm1, %v1650_v1 }
  0x25   :  { %1493 = vmatpush3.bf16.msra.mxu0 %v1490_v28  ;;  %1317 = vmatprep.mubr.msk.f32.mxu0 %vm250_vm1, %v1655_v2  ;;  %v1140_v28 = vld [vmem:[%s1937_s5 + $0x58] sm:$0xff] }
  0x26   :  { %1495 = vmatprep.subr.bf16.mxu0 %v1494_v31 }
  0x28   :  { %1318 = vmatmul.mubr.msk.f32.gmra.mrb[10].mxu0 %vm250_vm1, %v1662_v4 }
  0x29   :  { %1497 = vmatpush3.bf16.msra.mxu0 %v1494_v31  ;;  %v749_v31 = vld [vmem:[%s1937_s5 + $0x8] sm:$0xff] }
  0x2a   :  { %1499 = vmatprep.subr.bf16.mxu0 %v1498_v34 }
  0x2d   :  { %1501 = vmatpush3.bf16.msra.mxu0 %v1498_v34 }
  0x2e   :  { %1503 = vmatprep.subr.bf16.mxu0 %v1502_v37 }
  0x31   :  { %1505 = vmatpush3.bf16.msra.mxu0 %v1502_v37  ;;  %v1562_v37 = vpack.c.bf16 %v753_v36, %v752_v35 }
  0x32   :  { %1507 = vmatprep.subr.bf16.mxu0 %v1506_v40 }
  0xdf   :  { %v1280_v43 = vpop.f32.mrb[0].mxu0 }
  0xe0   :  { %v117_v44 = vpop.f32.mrb[1].mxu0 }
  0xe1   :  { %1336 = vmatprep.mubr.msk.f32.mxu0 %vm250_vm1, %v117_v44  ;;  %v1155_v44 = vld [vmem:[%s1937_s5 + $0x90] sm:$0xff] }
  0xe2   :  { %1337 = vmatmul.mubr.msk.f32.vlgmr.msra.gmra.mrb[8].mxu0 %vm250_vm1, %v1280_v43  ;;  %v1570_v43 = vpack.c.bf16 %v1154_v42, %v1153_v41 }
  0xe3   :  { %1509 = vmatpush3.bf16.msra.mxu0 %v1506_v40  ;;  %v1283_v48 = vpop.f32.mrb[2].mxu0  ;;  %v1566_v40 = vpack.c.bf16 %v755_v39, %v754_v38 }
  0xe4   :  { %1511 = vmatprep.subr.bf16.mxu0 %v1510_v45  ;;  %v127_v49 = vpop.f32.mrb[3].mxu0 }
  0xe5   :  { %1339 = vmatprep.mubr.msk.f32.mxu0 %vm250_vm1, %v127_v49  ;;  %v1157_v49 = vld [vmem:[%s1937_s5 + $0xa0] sm:$0xff] }
  0xe6   :  { %1340 = vmatmul.mubr.msk.f32.gmra.mrb[10].mxu0 %vm250_vm1, %v1283_v48 }
  0xe7   :  { %1513 = vmatpush3.bf16.msra.mxu0 %v1510_v45  ;;  %v1294_v53 = vpop.f32.mrb[4].mxu0  ;;  %v1156_v45 = vld [vmem:[%s1937_s5 + $0x98] sm:$0xff] }
  0xe8   :  { %1515 = vmatprep.subr.bf16.mxu0 %v1514_v50  ;;  %v214_v55 = vpop.f32.mrb[5].mxu0  ;;  %v1574_v48 = vpack.c.bf16 %v1156_v45, %v1155_v44 }
  0xe9   :  { %1358 = vmatprep.mubr.msk.f32.mxu0 %vm250_vm1, %v214_v55  ;;  %v1160_v55 = vld [vmem:[%s1937_s5 + $0xb8] sm:$0xff] }
  0xeb   :  { %1517 = vmatpush3.bf16.msra.mxu0 %v1514_v50  ;;  %v1297_v56 = vpop.f32.mrb[6].mxu0  ;;  %v1158_v50 = vld [vmem:[%s1937_s5 + $0xa8] sm:$0xff] }
  0xec   :  { %1519 = vmatprep.subr.bf16.mxu0 %v1518_v54  ;;  %v224_v57 = vpop.f32.mrb[7].mxu0 }
  0xef   :  { %1521 = vmatpush3.bf16.msra.mxu0 %v1518_v54  ;;  %v1159_v54 = vld [vmem:[%s1937_s5 + $0xb0] sm:$0xff] }
  0xf2   :  { %1359 = vmatmul.mubr.msk.f32.vlgmr.msra.gmra.mrb[8].mxu0 %vm250_vm1, %v1294_v53  ;;  %v1578_v53 = vpack.c.bf16 %v1158_v50, %v1157_v49 }
  0xf3   :  { %1361 = vmatprep.mubr.msk.f32.mxu0 %vm250_vm1, %v224_v57  ;;  %v1582_v57 = vpack.c.bf16 %v1160_v55, %v1159_v54 }
  0xf6   :  { %1362 = vmatmul.mubr.msk.f32.gmra.mrb[10].mxu0 %vm250_vm1, %v1297_v56 }
 0x1c5   :  { %v1360_v59 = vpop.f32.mrb[8].mxu0 }
 0x1c6   :  { %v563_v60 = vadd.f32 %v1360_v59, %v1128_v58  ;;  %v532_v61 = vpop.f32.mrb[9].mxu0 }
 0x1c7   :  { %v562_v62 = vadd.f32 %v1128_v58, %v532_v61  ;;  %v1165_v61 = vld [vmem:[%s1938_s6] ss:$0 sm:$0xff] }
 0x1c8   :  { %vm567_vm2 = vcmp.gt.f32.partialorder %v563_v60, 0.0  ;;  %v571_v63 = vmul.f32 0.01, %v563_v60 }
 0x1c9   :  { %vm566_vm3 = vcmp.gt.f32.partialorder %v562_v62, 0.0  ;;  %v570_v3 = vmul.f32 0.01, %v562_v62  ;;  %v1363_v5 = vpop.f32.mrb[10].mxu0 }
 0x1ca   :  { %v575_v6 = vsel %vm567_vm2, %v563_v60, %v571_v63  ;;  %v565_v9 = vadd.f32 %v1363_v5, %v1128_v58  ;;  %v542_v10 = vpop.f32.mrb[11].mxu0 }
 0x1cb   :  { %v574_v13 = vsel %vm566_vm3, %v562_v62, %v570_v3  ;;  %v564_v14 = vadd.f32 %v1128_v58, %v542_v10 }
 0x1cc   :  { %v1522_v15 = vpack.c.bf16 %v575_v6, %v574_v13  ;;  %vm569_vm4 = vcmp.gt.f32.partialorder %v565_v9, 0.0  ;;  %v573_v18 = vmul.f32 0.01, %v565_v9 }
 0x1cd   :  { %vm568_vm5 = vcmp.gt.f32.partialorder %v564_v14, 0.0  ;;  %v572_v19 = vmul.f32 0.01, %v564_v14 }
 0x1ce   :  { %v577_v20 = vsel %vm569_vm4, %v565_v9, %v573_v18  ;;  %1523 = vmatprep.subr.bf16.mxu1 %v1522_v15 }
 0x1cf   :  { %v576_v22 = vsel %vm568_vm5, %v564_v14, %v572_v19  ;;  %1525 = vmatpush3.bf16.msra.mxu1 %v1522_v15 }
 0x1d0   :  { %v1526_v23 = vpack.c.bf16 %v577_v20, %v576_v22 }
 0x1d2   :  { %1527 = vmatprep.subr.bf16.mxu1 %v1526_v23 }
 0x1d3   :  { %1529 = vmatpush3.bf16.msra.mxu1 %v1526_v23 }
 0x1d4   :  { %1531 = vmatprep.subr.bf16.mxu1 %v1522_v15 }
 0x1d6   :  { %1373 = vmatmul.mubr.msk.f32.vlgmr.msra.gmra.mrb[0].mxu1 %vm38_vm0, %v1674_v7  ;;  %v1542_v7 = vpack.c.bf16 %v1140_v28, %v1139_v27 }
 0x1d7   :  { %1533 = vmatpush3.bf16.msra.mxu1 %v1522_v15  ;;  %1375 = vmatprep.mubr.msk.f32.mxu1 %vm38_vm0, %v1679_v8  ;;  %v1141_v8 = vld [vmem:[%s1937_s5 + $0x60] sm:$0xff] }
 0x1d8   :  { %1535 = vmatprep.subr.bf16.mxu1 %v1526_v23 }
 0x1da   :  { %1376 = vmatmul.mubr.msk.f32.gmra.mrb[2].mxu1 %vm38_vm0, %v1694_v11  ;;  %v1546_v11 = vpack.c.bf16 %v1142_v29, %v1141_v8 }
 0x1db   :  { %1537 = vmatpush3.bf16.msra.mxu1 %v1526_v23  ;;  %1386 = vmatprep.mubr.msk.f32.mxu1 %vm38_vm0, %v1699_v12  ;;  %v1143_v12 = vld [vmem:[%s1937_s5 + $0x70] sm:$0xff] }
 0x1dc   :  { %1539 = vmatprep.subr.bf16.mxu1 %v1538_v26 }
 0x1de   :  { %1387 = vmatmul.mubr.msk.f32.vlgmr.msra.gmra.mrb[4].mxu1 %vm38_vm0, %v1714_v16  ;;  %v1550_v16 = vpack.c.bf16 %v1144_v30, %v1143_v12 }
 0x1df   :  { %1541 = vmatpush3.bf16.msra.mxu1 %v1538_v26  ;;  %1389 = vmatprep.mubr.msk.f32.mxu1 %vm38_vm0, %v1719_v17  ;;  %v748_v17 = vld [vmem:[%s1937_s5] sm:$0xff] }
 0x1e0   :  { %1543 = vmatprep.subr.bf16.mxu1 %v1542_v7  ;;  %v1554_v32 = vpack.c.bf16 %v749_v31, %v748_v17 }
 0x1e2   :  { %1390 = vmatmul.mubr.msk.f32.gmra.mrb[6].mxu1 %vm38_vm0, %v1734_v21  ;;  %v750_v21 = vld [vmem:[%s1937_s5 + $0x10] sm:$0xff] }
 0x1e3   :  { %1545 = vmatpush3.bf16.msra.mxu1 %v1542_v7  ;;  %1408 = vmatprep.mubr.msk.f32.mxu1 %vm250_vm1, %v574_v13  ;;  %v1558_v34 = vpack.c.bf16 %v751_v33, %v750_v21 }
 0x1e4   :  { %1547 = vmatprep.subr.bf16.mxu1 %v1546_v11 }
 0x1e7   :  { %1549 = vmatpush3.bf16.msra.mxu1 %v1546_v11 }
 0x1e8   :  { %1551 = vmatprep.subr.bf16.mxu1 %v1550_v16 }
 0x1eb   :  { %1553 = vmatpush3.bf16.msra.mxu1 %v1550_v16 }
 0x1ec   :  { %1555 = vmatprep.subr.bf16.mxu1 %v1554_v32 }
 0x1ee   :  { %1409 = vmatmul.mubr.msk.f32.vlgmr.msra.gmra.mrb[8].mxu1 %vm250_vm1, %v575_v6 }
 0x1ef   :  { %1411 = vmatprep.mubr.msk.f32.mxu1 %vm250_vm1, %v576_v22  ;;  %1557 = vmatpush3.bf16.msra.mxu1 %v1554_v32 }
 0x1f0   :  { %1559 = vmatprep.subr.bf16.mxu1 %v1558_v34 }
 0x1f2   :  { %1412 = vmatmul.mubr.msk.f32.gmra.mrb[10].mxu1 %vm250_vm1, %v577_v20 }
 0x1f3   :  { %1561 = vmatpush3.bf16.msra.mxu1 %v1558_v34 }
 0x1f4   :  { %1563 = vmatprep.subr.bf16.mxu1 %v1562_v37 }
 0x1f7   :  { %1565 = vmatpush3.bf16.msra.mxu1 %v1562_v37 }
 0x1f8   :  { %1567 = vmatprep.subr.bf16.mxu1 %v1566_v40 }
 0x1fb   :  { %1569 = vmatpush3.bf16.msra.mxu1 %v1566_v40 }
 0x1fc   :  { %1571 = vmatprep.subr.bf16.mxu1 %v1570_v43 }
 0x2a9   :  { %v1374_v46 = vpop.f32.mrb[0].mxu1 }
 0x2aa   :  { %v644_v47 = vpop.f32.mrb[1].mxu1 }
 0x2ab   :  { %1430 = vmatprep.mubr.msk.f32.mxu1 %vm250_vm1, %v644_v47 }
 0x2ac   :  { %1431 = vmatmul.mubr.msk.f32.vlgmr.msra.gmra.mrb[8].mxu1 %vm250_vm1, %v1374_v46 }
 0x2ad   :  { %1573 = vmatpush3.bf16.msra.mxu1 %v1570_v43  ;;  %v1377_v51 = vpop.f32.mrb[2].mxu1 }
 0x2ae   :  { %1575 = vmatprep.subr.bf16.mxu1 %v1574_v48  ;;  %v654_v52 = vpop.f32.mrb[3].mxu1 }
 0x2af   :  { %1433 = vmatprep.mubr.msk.f32.mxu1 %vm250_vm1, %v654_v52 }
 0x2b0   :  { %1434 = vmatmul.mubr.msk.f32.gmra.mrb[10].mxu1 %vm250_vm1, %v1377_v51 }
 0x2b1   :  { %1577 = vmatpush3.bf16.msra.mxu1 %v1574_v48  ;;  %v1388_v56 = vpop.f32.mrb[4].mxu1 }
 0x2b2   :  { %1579 = vmatprep.subr.bf16.mxu1 %v1578_v53  ;;  %v729_v58 = vpop.f32.mrb[5].mxu1 }
 0x2b3   :  { %1452 = vmatprep.mubr.msk.f32.mxu1 %vm250_vm1, %v729_v58 }
 0x2b5   :  { %1581 = vmatpush3.bf16.msra.mxu1 %v1578_v53  ;;  %v1391_v59 = vpop.f32.mrb[6].mxu1 }
 0x2b6   :  { %1583 = vmatprep.subr.bf16.mxu1 %v1582_v57  ;;  %v739_v60 = vpop.f32.mrb[7].mxu1 }
 0x2b9   :  { %1585 = vmatpush3.bf16.msra.mxu1 %v1582_v57 }
 0x2bc   :  { %1453 = vmatmul.mubr.msk.f32.vlgmr.msra.gmra.mrb[8].mxu1 %vm250_vm1, %v1388_v56 }
 0x2bd   :  { %1455 = vmatprep.mubr.msk.f32.mxu1 %vm250_vm1, %v739_v60 }
 0x2c0   :  { %1456 = vmatmul.mubr.msk.f32.gmra.mrb[10].mxu1 %vm250_vm1, %v1391_v59 }
 0x38f   :  { %v1454_v62 = vpop.f32.mrb[8].mxu1 }
 0x390   :  { %v1077_v63 = vadd.f32 %v1454_v62, %v1165_v61  ;;  %v1046_v3 = vpop.f32.mrb[9].mxu1 }
 0x391   :  { %v1076_v5 = vadd.f32 %v1165_v61, %v1046_v3 }
 0x392   :  { %v1081_v6 = vadd.f32 %v1077_v63, %v1650_v1 }
 0x393   :  { %v1080_v9 = vadd.f32 %v1076_v5, %v1645_v0  ;;  %v1457_v10 = vpop.f32.mrb[10].mxu1 }
 0x394   :  { %1085 = vst.msk [vmem:[%s1939_s7 + $0x8] sm:$0xff] %vm250_vm1, %v1081_v6  ;;  %v1079_v13 = vadd.f32 %v1457_v10, %v1165_v61  ;;  %v1056_v14 = vpop.f32.mrb[11].mxu1 }
 0x395   :  { %1084 = vst.msk [vmem:[%s1939_s7] sm:$0xff] %vm250_vm1, %v1080_v9  ;;  %v1078_v15 = vadd.f32 %v1165_v61, %v1056_v14 }
 0x396   :  { %v1083_v18 = vadd.f32 %v1079_v13, %v1662_v4 }
 0x397   :  { %v1082_v1 = vadd.f32 %v1078_v15, %v1655_v2 }
 0x398   :  { %1087 = vst.msk [vmem:[%s1939_s7 + $0x18] sm:$0xff] %vm250_vm1, %v1083_v18 }
 0x399   :  { %1086 = vst.msk [vmem:[%s1939_s7 + $0x10] sm:$0xff] %vm250_vm1, %v1082_v1 }

</bundles_post_ra>
